<compile_context>
chip_gen: v5e
topology: v5e:2x2
jax: 0.10.0
libtpu: 0.0.40
codegen_flags: <defaults>
</compile_context>

<pallas_src>
import math

import jax
import jax.numpy as jnp
from jax.experimental import pallas as pl
from jax.experimental.pallas import tpu as pltpu


def _round_up(x: int, m: int) -> int:
    return ((x + m - 1) // m) * m


def _value_embed_kernel(x_ref, w_ref, b_ref, o_ref):
    # x_ref: (tile_rows, k); w_ref: (k, e_cols); b_ref: (1, e_cols)
    x = x_ref[...].astype(jnp.float32)
    w = w_ref[...].astype(jnp.float32)
    b = b_ref[...].astype(jnp.float32)
    if x.shape[1] == 1:
        # K == 1: plain VPU broadcast FMA (MXU would be ~0% utilized).
        y = x * w + b
    else:
        # Folded small-E path: (tile_rows, k) @ (k, 128) block-diagonal
        # expansion -> lane-dense 128-wide rows. K is tiny, but the kernel is
        # HBM-write bound so MXU time is irrelevant.
        y = jnp.dot(x, w, preferred_element_type=jnp.float32) + b
    o_ref[...] = y.astype(o_ref.dtype)


_VMEM_BUDGET_BYTES = 24 * 1024 * 1024   # x + out tiles, double-buffered
_VMEM_LIMIT_BYTES = 48 * 1024 * 1024    # > v5e's 16 MiB default, < v7x's 64 MiB VMEM


def value_embed(x, weight, bias, *, out_dtype=None):
    """x: (..., 1); weight: (E, 1); bias: (E,). Returns (..., E).

    out_dtype defaults to x.dtype; pass jnp.bfloat16 to halve HBM write
    traffic (this kernel is entirely output-write bound).
    """
    E = int(weight.shape[0])
    lead_shape = x.shape[:-1]
    N = math.prod(lead_shape) if lead_shape else 1
    out_dtype = jnp.dtype(x.dtype if out_dtype is None else out_dtype)
    out_itemsize = out_dtype.itemsize
    x_itemsize = jnp.dtype(x.dtype).itemsize

    if N == 0 or E == 0:
        return jnp.zeros((*lead_shape, E), dtype=out_dtype)

    w_row = weight.reshape(1, E)
    b_row = bias.reshape(1, E)

    # Small-E fast path: fold k = 128 // E logical rows per 128-lane row.
    k = 128 // E if (E < 128 and 128 % E == 0) else 1
    if k > 1 and N % k == 0:
        n_rows = N // k
        e_cols = k * E                                           # == 128
        x2 = x.reshape(n_rows, k)
        w2 = jnp.kron(jnp.eye(k, dtype=weight.dtype), w_row)     # (k, 128)
        b2 = jnp.tile(b_row, (1, k))                             # (1, 128)
    else:
        k = 1
        n_rows = N
        e_cols = E
        x2 = x.reshape(n_rows, 1)
        w2 = w_row
        b2 = b_row

    # Row-tile size under a VMEM budget that counts both the output tile and
    # the lane-padded x tile (the x block's last dim occupies 128 lanes).
    out_row_bytes = _round_up(e_cols, 128) * out_itemsize
    x_row_bytes = 128 * x_itemsize
    per_buffer_set = _VMEM_BUDGET_BYTES // 2                     # double buffering
    tile_rows = per_buffer_set // (out_row_bytes + x_row_bytes)
    if tile_rows >= n_rows:
        tile_rows = n_rows            # full dim: exempt from tiling constraints
    else:
        tile_rows = max(32, (tile_rows // 32) * 32)   # sublane-safe f32/bf16/int8

    grid = (pl.cdiv(n_rows, tile_rows),)

    cost = pl.CostEstimate(
        flops=2 * N * E,
        transcendentals=0,
        bytes_accessed=(N * x_itemsize
                        + 2 * E * jnp.dtype(weight.dtype).itemsize
                        + N * E * out_itemsize),
    )

    out = pl.pallas_call(
        _value_embed_kernel,
        out_shape=jax.ShapeDtypeStruct((n_rows, e_cols), out_dtype),
        grid=grid,
        in_specs=[
            # Row tile of inputs; streamed over the grid (ragged last block
            # is masked by Pallas -- no padding needed).
            pl.BlockSpec((tile_rows, k), lambda i: (i, 0)),
            # weight/bias: constant block index -> resident in VMEM.
            pl.BlockSpec((w2.shape[0], e_cols), lambda i: (0, 0)),
            pl.BlockSpec((1, e_cols), lambda i: (0, 0)),
        ],
        out_specs=pl.BlockSpec((tile_rows, e_cols), lambda i: (i, 0)),
        compiler_params=pltpu.CompilerParams(
            # TODO(synk): on v7x, measure pltpu.CORE_PARALLEL on this axis to
            # split row tiles across both TensorCores.
            dimension_semantics=("parallel",),
            vmem_limit_bytes=_VMEM_LIMIT_BYTES,
        ),
        cost_estimate=cost,
    )(x2, w2, b2)

    # (n_rows, e_cols) row-major is bit-identical to (N, E) row-major.
    return out.reshape(*lead_shape, E)


if __name__ == "__main__":
    key = jax.random.PRNGKey(0)
    k_x, k_w, k_b = jax.random.split(key, 3)

    batch, seq, embed_dim = 2, 8, 32

    # nn.Linear(1, embed_dim) parameters.
    weight = jax.random.normal(k_w, (embed_dim, 1), dtype=jnp.float32) * 0.5
    bias = jax.random.normal(k_b, (embed_dim,), dtype=jnp.float32) * 0.1

    # Input: scalar value per (batch, seq) position, last dim = 1.
    x = jax.random.normal(k_x, (batch, seq, 1), dtype=jnp.float32)

    # Folded lane-dense path (E=32 -> k=4, 128-wide unmasked stores).
    y = jax.block_until_ready(value_embed(x, weight, bias))
    y_ref = x @ weight.T + bias
    assert y.shape == (batch, seq, embed_dim)
    assert y.dtype == x.dtype
    assert jnp.allclose(y, y_ref, atol=1e-5, rtol=1e-5)

    # General path (E=48: full-E block, masked stores, no pad columns).
    e2 = 48
    weight2 = jax.random.normal(k_w, (e2, 1), dtype=jnp.float32) * 0.5
    bias2 = jax.random.normal(k_b, (e2,), dtype=jnp.float32) * 0.1
    y2 = jax.block_until_ready(value_embed(x, weight2, bias2))
    assert jnp.allclose(y2, x @ weight2.T + bias2, atol=1e-5, rtol=1e-5)

    print("KERNEL_OK")
</pallas_src>

<mosaic_0001>
module attributes {stable_mosaic.version = 11 : i64} {
  func.func @_value_embed_kernel(%arg0: i32, %arg1: memref<4x4xf32, #tpu.memory_space<vmem>>, %arg2: memref<4x128xf32, #tpu.memory_space<vmem>>, %arg3: memref<1x128xf32, #tpu.memory_space<vmem>>, %arg4: memref<4x128xf32, #tpu.memory_space<vmem>>) attributes {dimension_semantics = [#tpu.dimension_semantics<parallel>], iteration_bounds = array<i64: 1>, scalar_prefetch = 0 : i64, scratch_operands = 0 : i64, tpu.core_type = #tpu.core_type<tc>, window_params = [{transform_indices = @transform_0, window_bounds = array<i64: 4, 4>}, {pipeline_mode = #tpu.pipeline_mode<synchronous>, transform_indices = @transform_1, window_bounds = array<i64: 4, 128>}, {pipeline_mode = #tpu.pipeline_mode<synchronous>, transform_indices = @transform_2, window_bounds = array<i64: 1, 128>}, {transform_indices = @transform_3, window_bounds = array<i64: 4, 128>}]} {
    %c0 = arith.constant 0 : index
    %c0_0 = arith.constant 0 : index
    %0 = vector.load %arg1[%c0, %c0_0] : memref<4x4xf32, #tpu.memory_space<vmem>>, vector<4x4xf32>
    %c0_1 = arith.constant 0 : index
    %c0_2 = arith.constant 0 : index
    %1 = vector.load %arg2[%c0_1, %c0_2] : memref<4x128xf32, #tpu.memory_space<vmem>>, vector<4x128xf32>
    %c0_3 = arith.constant 0 : index
    %c0_4 = arith.constant 0 : index
    %2 = vector.load %arg3[%c0_3, %c0_4] : memref<1x128xf32, #tpu.memory_space<vmem>>, vector<1x128xf32>
    %cst = arith.constant dense<0.000000e+00> : vector<4x128xf32>
    %3 = tpu.matmul %0, %1, %cst {dimension_numbers = #tpu.dot_dimension_numbers<[1], [0], [0], [1], [0, 0, 1, 1], [], []>} : vector<4x4xf32>, vector<4x128xf32>, vector<4x128xf32> -> vector<4x128xf32>
    %4 = vector.broadcast %2 : vector<1x128xf32> to vector<4x128xf32>
    %5 = arith.addf %3, %4 : vector<4x128xf32>
    %c0_5 = arith.constant 0 : index
    %c0_6 = arith.constant 0 : index
    %6 = vector.load %arg4[%c0_5, %c0_6] : memref<4x128xf32, #tpu.memory_space<vmem>>, vector<4x128xf32>
    tpu.vector_store %arg4[%c0_5, %c0_6], %5 {strides = array<i32>} : memref<4x128xf32, #tpu.memory_space<vmem>>, vector<4x128xf32>,
    return
  }
  func.func @transform_0(%arg0: i32) -> (i32, i32) {
    %c0_i32 = arith.constant 0 : i32
    %c0_i32_0 = arith.constant 0 : i32
    return %arg0, %c0_i32 : i32, i32
  }
  func.func @transform_1(%arg0: i32) -> (i32, i32) {
    %c0_i32 = arith.constant 0 : i32
    %c0_i32_0 = arith.constant 0 : i32
    %c0_i32_1 = arith.constant 0 : i32
    return %c0_i32, %c0_i32_0 : i32, i32
  }
  func.func @transform_2(%arg0: i32) -> (i32, i32) {
    %c0_i32 = arith.constant 0 : i32
    %c0_i32_0 = arith.constant 0 : i32
    %c0_i32_1 = arith.constant 0 : i32
    return %c0_i32, %c0_i32_0 : i32, i32
  }
  func.func @transform_3(%arg0: i32) -> (i32, i32) {
    %c0_i32 = arith.constant 0 : i32
    %c0_i32_0 = arith.constant 0 : i32
    return %arg0, %c0_i32 : i32, i32
  }
}

</mosaic_0001>

<bundles_post_ra>
// kernel: tpu_custom_call.1
= control target key start
LH: loop header
LB: loop body
LE: loop exit
PB: predicated region body
PF: predicated region fallthrough
CT: control target
= control target key end

     0   :  { %8 = vsyncpa [#allocation3], 0  ;;  %s215_s0 = inlined_call_operand.hbm [shape: f32[4,4], index: 0, kind: input, shape index: {}]   ;;  %s216_s1 = inlined_call_operand.hbm [shape: f32[4,128], index: 1, kind: input, shape index: {}]   ;;  %s217_s2 = inlined_call_operand.vmem [shape: f32[1,128], index: 2, kind: input, shape index: {}]   ;;  %s218_s3 = inlined_call_operand.hbm [shape: f32[4,128], index: 3, kind: output, shape index: {}]  }
   0x1   :  { %9 = vsyncpa [#allocation6], 0 }
   0x2   :  { %10 = vsyncpa [#allocation4], 0  ;;  %s16_s14 = sshll.u32 %s215_s0, 4  ;;  %s180_s15 = smov [#allocation2]   ;;  %s17_s14 = int_to_ptr.hbm [resolvable:$true] %s16_s14 }
   0x3   :  { %s18_s16 = sshll.u32 %s180_s15, 4  ;;  %s27_s19 = sshll.u32 %s216_s1, 4  ;;  %s19_s16 = int_to_ptr.vmem [resolvable:$true] %s18_s16  ;;  %s28_s19 = int_to_ptr.hbm [resolvable:$true] %s27_s19 }
   0x4   :  { %21 = dma.hbm_to_vmem [thread:$0]  %s17_s14, 64, %s19_s16, [#allocation3]  }
   0x5   :  { %s181_s20 = smov [#allocation5]  }
   0x6   :  { %s29_s21 = sshll.u32 %s181_s20, 4  ;;  %s30_s21 = int_to_ptr.vmem [resolvable:$true] %s29_s21 }
   0x7   :  { %32 = dma.hbm_to_vmem [thread:$0]  %s28_s19, 64, %s30_s21, [#allocation6]  }
   0x8   :  { %174 = dma.done.wait [#allocation3], 64  }
   0x9   :  { %175 = vsyncadd [#allocation3], 4294967232 }
   0xa   :  { %176 = dma.done.wait [#allocation6], 64  }
   0xb   :  { %177 = vsyncadd [#allocation6], 4294967232  ;;  %vm53_vm0 = vcmask 1043456   ;;  %vm49_vm1 = vcmask 31744   ;;  %v44_v0 = vld [vmem:[#allocation5] sm:$0xf] }
   0xc   :  { %v43_v1 = vld [vmem:[#allocation2] sm:$0xf]  ;;  %96 = vmatpush.msk.msra.mxu0 %vm53_vm0, %v44_v0  ;;  %s182_s1 = smov [#allocation7]   ;;  %s85_s26 = sshll.u32 %s218_s3, 4  ;;  %s86_s26 = int_to_ptr.hbm [resolvable:$true] %s85_s26 }
   0xd   :  { %97 = vmatmul.msk.f32.vlgmr.msra.gmra.mxu0 %vm49_vm1, %v43_v1  ;;  %v101_v2 = vld [vmem:[%s217_s2] ss:$0 sm:$0xff]  ;;  %s83_s23 = sshll.u32 %s182_s1, 4  ;;  %s84_s23 = int_to_ptr.vmem [resolvable:$true] %s83_s23 }
  0x8a   :  { %v74_v3 = vpop.f32.mrf.mxu0 }
  0x8b   :  { %v75_v4 = vadd.f32 %v101_v2, %v74_v3 }
  0x8d   :  { %77 = vst [vmem:[#allocation7] sm:$0xf] %v75_v4 }
  0x8e   :  { %88 = dma.vmem_to_hbm [thread:$0]  %s84_s23, 64, %s86_s26, [#allocation4]  }
  0x8f   :  { %178 = dma.done.wait [#allocation4], 64  }
  0x90   :  { %179 = vsyncadd [#allocation4], 4294967232 }
  0x91   :  { %93 = vsyncpa [#allocation3], 1 }
  0x92   :  { %94 = vsyncpa [#allocation6], 1 }
  0x93   :  { %95 = vsyncpa [#allocation4], 1 }

</bundles_post_ra>
